<compile_context>
chip_gen: v5e
topology: v5e:2x2
jax: 0.10.0
libtpu: 0.0.40
codegen_flags: <defaults>
</compile_context>

<pallas_src>
from functools import partial

import jax
import jax.numpy as jnp
from jax.experimental import pallas as pl
from jax.experimental.pallas import tpu as pltpu


def _round_up(n, m):
    return (n + m - 1) // m * m


def _pick_b_tile(B, b_tile_max=1024):
    """Batch tile: single full-dim block for small B; >=2 aligned tiles for large B."""
    if B <= 256:
        # Block dim == full array dim is always layout-legal; grid has one step.
        return B
    # Prefer >= 2 grid steps so the "parallel" batch axis can shard across v7x's 2 TCs.
    return min(b_tile_max, _round_up(pl.cdiv(B, 2), 128))


def mlp_kernel(x_ref, w1_ref, b1_ref, w2_ref, b2_ref, w3_ref, b3_ref, o_ref):
    # Layer 1: Linear(784->32) + ReLU.  x arrives f32 from HBM; cast to bf16 in VMEM
    # (VPU work hidden under the dominant x DMA), accumulate in f32 on the MXU.
    x = x_ref[...].astype(jnp.bfloat16)
    h1 = jnp.dot(x, w1_ref[...], preferred_element_type=jnp.float32)
    h1 = jnp.maximum(h1 + b1_ref[...], 0.0)
    # Layer 2: Linear(32->16) + ReLU (tiny; lives entirely under layer-1 slack).
    h2 = jnp.dot(h1.astype(jnp.bfloat16), w2_ref[...], preferred_element_type=jnp.float32)
    h2 = jnp.maximum(h2 + b2_ref[...], 0.0)
    # Layer 3: Linear(16->10), output columns padded to 16; store bf16 to halve writeback.
    o = jnp.dot(h2.astype(jnp.bfloat16), w3_ref[...], preferred_element_type=jnp.float32)
    o_ref[...] = (o + b3_ref[...]).astype(o_ref.dtype)


@partial(jax.jit, static_argnames=("b_tile_max",))
def smallnet_forward(x, params, *, b_tile_max=1024):
    """x: [B, 784] float32 -> [B, 10] float32."""
    w1, b1, w2, b2, w3, b3 = params
    B, K = x.shape
    H1 = w1.shape[1]          # 32
    H2 = w2.shape[1]          # 16
    N_OUT = w3.shape[1]       # 10
    N_PAD = 16                # lane-padded output width (block dim == full array dim)

    b_tile = _pick_b_tile(B, b_tile_max)
    grid = (pl.cdiv(B, b_tile),)

    # Weights are tiny: one-time bf16 cast (fused under jit).  Biases stay f32.
    w1_b = w1.astype(jnp.bfloat16)
    w2_b = w2.astype(jnp.bfloat16)
    w3_p = jnp.zeros((H2, N_PAD), jnp.bfloat16).at[:, :N_OUT].set(w3.astype(jnp.bfloat16))
    b1_f = b1.astype(jnp.float32)
    b2_f = b2.astype(jnp.float32)
    b3_p = jnp.zeros((1, N_PAD), jnp.float32).at[:, :N_OUT].set(b3.astype(jnp.float32))

    out = pl.pallas_call(
        mlp_kernel,
        out_shape=jax.ShapeDtypeStruct((B, N_PAD), jnp.bfloat16),
        grid_spec=pltpu.PrefetchScalarGridSpec(
            num_scalar_prefetch=0,
            grid=grid,
            in_specs=[
                # x: tiled over batch; double-buffered HBM->VMEM by the Pallas pipeline.
                # Last dim 784 == full array dim, so no K padding / host copy needed.
                pl.BlockSpec((b_tile, K), lambda i: (i, 0)),
                # Weights / biases: constant index_map -> VMEM-resident across steps.
                pl.BlockSpec((K, H1), lambda i: (0, 0)),
                pl.BlockSpec((1, H1), lambda i: (0, 0)),
                pl.BlockSpec((H1, H2), lambda i: (0, 0)),
                pl.BlockSpec((1, H2), lambda i: (0, 0)),
                pl.BlockSpec((H2, N_PAD), lambda i: (0, 0)),
                pl.BlockSpec((1, N_PAD), lambda i: (0, 0)),
            ],
            out_specs=pl.BlockSpec((b_tile, N_PAD), lambda i: (i, 0)),
        ),
        compiler_params=pltpu.CompilerParams(
            dimension_semantics=("parallel",),  # shards batch tiles across TCs on v7x
        ),
    )(x, w1_b, b1_f, w2_b, b2_f, w3_p, b3_p)

    # Tiny epilogue (16 bf16 cols/row): slice off padding, restore f32 output dtype.
    return out[:, :N_OUT].astype(jnp.float32)


def init_params(key):
    """Deterministic parameter init mirroring nn.Linear shapes.

    PyTorch stores weight as [out, in]; we store the transpose [in, out].
    Uses uniform(-1/sqrt(fan_in), 1/sqrt(fan_in)) like PyTorch's default init.
    """
    dims = [(784, 32), (32, 16), (16, 10)]
    params = []
    for (fan_in, fan_out) in dims:
        key, kw, kb = jax.random.split(key, 3)
        bound = 1.0 / (fan_in ** 0.5)
        w = jax.random.uniform(kw, (fan_in, fan_out), jnp.float32, -bound, bound)
        b = jax.random.uniform(kb, (1, fan_out), jnp.float32, -bound, bound)
        params.extend([w, b])
    return tuple(params)


def reference_forward_f32(x, params):
    w1, b1, w2, b2, w3, b3 = params
    h1 = jnp.maximum(x @ w1 + b1, 0.0)
    h2 = jnp.maximum(h1 @ w2 + b2, 0.0)
    return h2 @ w3 + b3


def reference_forward_bf16(x, params):
    """Pure-JAX reference with the same bf16-operand / f32-accumulate numerics."""
    w1, b1, w2, b2, w3, b3 = params
    xb = x.astype(jnp.bfloat16)
    h1 = jnp.dot(xb, w1.astype(jnp.bfloat16), preferred_element_type=jnp.float32) + b1
    h1 = jnp.maximum(h1, 0.0)
    h2 = jnp.dot(h1.astype(jnp.bfloat16), w2.astype(jnp.bfloat16),
                 preferred_element_type=jnp.float32) + b2
    h2 = jnp.maximum(h2, 0.0)
    return jnp.dot(h2.astype(jnp.bfloat16), w3.astype(jnp.bfloat16),
                   preferred_element_type=jnp.float32) + b3


if __name__ == "__main__":
    key = jax.random.PRNGKey(0)
    key, kx = jax.random.split(key)
    B = 8
    x = jax.random.normal(kx, (B, 784), jnp.float32)
    params = init_params(key)

    out = smallnet_forward(x, params)
    out = jax.block_until_ready(out)

    assert out.shape == (B, 10), out.shape
    ref_bf16 = reference_forward_bf16(x, params)
    assert jnp.allclose(out, ref_bf16, atol=2e-2, rtol=2e-2), "mismatch vs bf16 JAX reference"
    ref_f32 = reference_forward_f32(x, params)
    assert jnp.allclose(out, ref_f32, atol=5e-2, rtol=5e-2), "mismatch vs f32 JAX reference"

    print("KERNEL_OK")
</pallas_src>

<mosaic_0001>
module attributes {stable_mosaic.version = 11 : i64} {
  func.func @mlp_kernel(%arg0: i32, %arg1: memref<8x784xf32, #tpu.memory_space<vmem>>, %arg2: memref<784x32xbf16, #tpu.memory_space<vmem>>, %arg3: memref<1x32xf32, #tpu.memory_space<vmem>>, %arg4: memref<32x16xbf16, #tpu.memory_space<vmem>>, %arg5: memref<1x16xf32, #tpu.memory_space<vmem>>, %arg6: memref<16x16xbf16, #tpu.memory_space<vmem>>, %arg7: memref<1x16xf32, #tpu.memory_space<vmem>>, %arg8: memref<8x16xbf16, #tpu.memory_space<vmem>>) attributes {dimension_semantics = [#tpu.dimension_semantics<parallel>], iteration_bounds = array<i64: 1>, scalar_prefetch = 0 : i64, scratch_operands = 0 : i64, tpu.core_type = #tpu.core_type<tc>, window_params = [{transform_indices = @transform_0, window_bounds = array<i64: 8, 784>}, {pipeline_mode = #tpu.pipeline_mode<synchronous>, transform_indices = @transform_1, window_bounds = array<i64: 784, 32>}, {pipeline_mode = #tpu.pipeline_mode<synchronous>, transform_indices = @transform_2, window_bounds = array<i64: 1, 32>}, {pipeline_mode = #tpu.pipeline_mode<synchronous>, transform_indices = @transform_3, window_bounds = array<i64: 32, 16>}, {pipeline_mode = #tpu.pipeline_mode<synchronous>, transform_indices = @transform_4, window_bounds = array<i64: 1, 16>}, {pipeline_mode = #tpu.pipeline_mode<synchronous>, transform_indices = @transform_5, window_bounds = array<i64: 16, 16>}, {pipeline_mode = #tpu.pipeline_mode<synchronous>, transform_indices = @transform_6, window_bounds = array<i64: 1, 16>}, {transform_indices = @transform_7, window_bounds = array<i64: 8, 16>}]} {
    %c0 = arith.constant 0 : index
    %c0_0 = arith.constant 0 : index
    %0 = vector.load %arg1[%c0, %c0_0] : memref<8x784xf32, #tpu.memory_space<vmem>>, vector<8x784xf32>
    %1 = arith.truncf %0 : vector<8x784xf32> to vector<8x784xbf16>
    %c0_1 = arith.constant 0 : index
    %c0_2 = arith.constant 0 : index
    %2 = vector.load %arg2[%c0_1, %c0_2] : memref<784x32xbf16, #tpu.memory_space<vmem>>, vector<784x32xbf16>
    %cst = arith.constant dense<0.000000e+00> : vector<8x32xf32>
    %3 = tpu.matmul %1, %2, %cst {dimension_numbers = #tpu.dot_dimension_numbers<[1], [0], [0], [1], [0, 0, 1, 1], [], []>} : vector<8x784xbf16>, vector<784x32xbf16>, vector<8x32xf32> -> vector<8x32xf32>
    %c0_3 = arith.constant 0 : index
    %c0_4 = arith.constant 0 : index
    %4 = vector.load %arg3[%c0_3, %c0_4] : memref<1x32xf32, #tpu.memory_space<vmem>>, vector<1x32xf32>
    %5 = vector.broadcast %4 : vector<1x32xf32> to vector<8x32xf32>
    %6 = arith.addf %3, %5 : vector<8x32xf32>
    %cst_5 = arith.constant 0.000000e+00 : f32
    %7 = vector.broadcast %cst_5 : f32 to vector<8x32xf32>
    %8 = arith.maximumf %6, %7 : vector<8x32xf32>
    %9 = arith.truncf %8 : vector<8x32xf32> to vector<8x32xbf16>
    %c0_6 = arith.constant 0 : index
    %c0_7 = arith.constant 0 : index
    %10 = vector.load %arg4[%c0_6, %c0_7] : memref<32x16xbf16, #tpu.memory_space<vmem>>, vector<32x16xbf16>
    %cst_8 = arith.constant dense<0.000000e+00> : vector<8x16xf32>
    %11 = tpu.matmul %9, %10, %cst_8 {dimension_numbers = #tpu.dot_dimension_numbers<[1], [0], [0], [1], [0, 0, 1, 1], [], []>} : vector<8x32xbf16>, vector<32x16xbf16>, vector<8x16xf32> -> vector<8x16xf32>
    %c0_9 = arith.constant 0 : index
    %c0_10 = arith.constant 0 : index
    %12 = vector.load %arg5[%c0_9, %c0_10] : memref<1x16xf32, #tpu.memory_space<vmem>>, vector<1x16xf32>
    %13 = vector.broadcast %12 : vector<1x16xf32> to vector<8x16xf32>
    %14 = arith.addf %11, %13 : vector<8x16xf32>
    %cst_11 = arith.constant 0.000000e+00 : f32
    %15 = vector.broadcast %cst_11 : f32 to vector<8x16xf32>
    %16 = arith.maximumf %14, %15 : vector<8x16xf32>
    %17 = arith.truncf %16 : vector<8x16xf32> to vector<8x16xbf16>
    %c0_12 = arith.constant 0 : index
    %c0_13 = arith.constant 0 : index
    %18 = vector.load %arg6[%c0_12, %c0_13] : memref<16x16xbf16, #tpu.memory_space<vmem>>, vector<16x16xbf16>
    %cst_14 = arith.constant dense<0.000000e+00> : vector<8x16xf32>
    %19 = tpu.matmul %17, %18, %cst_14 {dimension_numbers = #tpu.dot_dimension_numbers<[1], [0], [0], [1], [0, 0, 1, 1], [], []>} : vector<8x16xbf16>, vector<16x16xbf16>, vector<8x16xf32> -> vector<8x16xf32>
    %c0_15 = arith.constant 0 : index
    %c0_16 = arith.constant 0 : index
    %20 = vector.load %arg7[%c0_15, %c0_16] : memref<1x16xf32, #tpu.memory_space<vmem>>, vector<1x16xf32>
    %21 = vector.broadcast %20 : vector<1x16xf32> to vector<8x16xf32>
    %22 = arith.addf %19, %21 : vector<8x16xf32>
    %23 = arith.truncf %22 : vector<8x16xf32> to vector<8x16xbf16>
    %c0_17 = arith.constant 0 : index
    %c0_18 = arith.constant 0 : index
    %24 = vector.load %arg8[%c0_17, %c0_18] : memref<8x16xbf16, #tpu.memory_space<vmem>>, vector<8x16xbf16>
    tpu.vector_store %arg8[%c0_17, %c0_18], %23 {strides = array<i32>} : memref<8x16xbf16, #tpu.memory_space<vmem>>, vector<8x16xbf16>,
    return
  }
  func.func @transform_0(%arg0: i32) -> (i32, i32) {
    %c0_i32 = arith.constant 0 : i32
    %c0_i32_0 = arith.constant 0 : i32
    return %arg0, %c0_i32 : i32, i32
  }
  func.func @transform_1(%arg0: i32) -> (i32, i32) {
    %c0_i32 = arith.constant 0 : i32
    %c0_i32_0 = arith.constant 0 : i32
    %c0_i32_1 = arith.constant 0 : i32
    return %c0_i32, %c0_i32_0 : i32, i32
  }
  func.func @transform_2(%arg0: i32) -> (i32, i32) {
    %c0_i32 = arith.constant 0 : i32
    %c0_i32_0 = arith.constant 0 : i32
    %c0_i32_1 = arith.constant 0 : i32
    return %c0_i32, %c0_i32_0 : i32, i32
  }
  func.func @transform_3(%arg0: i32) -> (i32, i32) {
    %c0_i32 = arith.constant 0 : i32
    %c0_i32_0 = arith.constant 0 : i32
    %c0_i32_1 = arith.constant 0 : i32
    return %c0_i32, %c0_i32_0 : i32, i32
  }
  func.func @transform_4(%arg0: i32) -> (i32, i32) {
    %c0_i32 = arith.constant 0 : i32
    %c0_i32_0 = arith.constant 0 : i32
    %c0_i32_1 = arith.constant 0 : i32
    return %c0_i32, %c0_i32_0 : i32, i32
  }
  func.func @transform_5(%arg0: i32) -> (i32, i32) {
    %c0_i32 = arith.constant 0 : i32
    %c0_i32_0 = arith.constant 0 : i32
    %c0_i32_1 = arith.constant 0 : i32
    return %c0_i32, %c0_i32_0 : i32, i32
  }
  func.func @transform_6(%arg0: i32) -> (i32, i32) {
    %c0_i32 = arith.constant 0 : i32
    %c0_i32_0 = arith.constant 0 : i32
    %c0_i32_1 = arith.constant 0 : i32
    return %c0_i32, %c0_i32_0 : i32, i32
  }
  func.func @transform_7(%arg0: i32) -> (i32, i32) {
    %c0_i32 = arith.constant 0 : i32
    %c0_i32_0 = arith.constant 0 : i32
    return %arg0, %c0_i32 : i32, i32
  }
}

</mosaic_0001>

<bundles_post_ra>
// kernel: smallnet_forward.1
= control target key start
LH: loop header
LB: loop body
LE: loop exit
PB: predicated region body
PF: predicated region fallthrough
CT: control target
= control target key end

     0   :  { %vm437_vm0 = vcmask 130048   ;;  %vm554_vm1 = vcmask 261120   ;;  %vm602_vm2 = vcmask 125952   ;;  %s1105_s1 = inlined_call_operand.vmem [shape: bf16[784,32], index: 1, kind: input, shape index: {}]   ;;  %s1106_s2 = inlined_call_operand.vmem [shape: f32[1,32], index: 2, kind: input, shape index: {}]   ;;  %s1107_s0 = inlined_call_operand.vmem [shape: f32[8,784], index: 0, kind: input, shape index: {}]   ;;  %s1108_s4 = inlined_call_operand.vmem [shape: f32[1,16], index: 4, kind: input, shape index: {}]   ;;  %s1109_s3 = inlined_call_operand.vmem [shape: bf16[32,16], index: 3, kind: input, shape index: {}]   ;;  %s1110_s5 = inlined_call_operand.vmem [shape: bf16[16,16], index: 5, kind: input, shape index: {}]   ;;  %s1111_s6 = inlined_call_operand.vmem [shape: f32[1,16], index: 6, kind: input, shape index: {}]   ;;  %s1112_s7 = inlined_call_operand.vmem [shape: bf16[8,16], index: 7, kind: output, shape index: {}]  }
   0x1   :  { %v826_v0 = vld [vmem:[%s1105_s1 + $0x38] sm:$0xff]  ;;  %v825_v3 = vld [vmem:[%s1105_s1 + $0x30] sm:$0xff]  ;;  %v824_v8 = vld [vmem:[%s1105_s1 + $0x28] sm:$0xff] }
   0x2   :  { %v834_v1 = vld [vmem:[%s1105_s1 + $0x78] sm:$0xff]  ;;  %441 = vmatpush.bf16.msra.mxu0 %v826_v0  ;;  %v833_v4 = vld [vmem:[%s1105_s1 + $0x70] sm:$0xff]  ;;  %v832_v9 = vld [vmem:[%s1105_s1 + $0x68] sm:$0xff] }
   0x3   :  { %v842_v2 = vld [vmem:[%s1105_s1 + $0xb8] sm:$0xff]  ;;  %454 = vmatpush.bf16.msra.mxu1 %v834_v1  ;;  %v841_v5 = vld [vmem:[%s1105_s1 + $0xb0] sm:$0xff]  ;;  %v840_v10 = vld [vmem:[%s1105_s1 + $0xa8] sm:$0xff] }
   0x4   :  { %467 = vmatpush.bf16.msra.mxu2 %v842_v2  ;;  %v850_v6 = vld [vmem:[%s1105_s1 + $0xf8] sm:$0xff]  ;;  %v849_v7 = vld [vmem:[%s1105_s1 + $0xf0] sm:$0xff]  ;;  %v848_v11 = vld [vmem:[%s1105_s1 + $0xe8] sm:$0xff] }
   0x5   :  { %480 = vmatpush.bf16.msra.mxu3 %v850_v6  ;;  %v823_v12 = vld [vmem:[%s1105_s1 + $0x20] sm:$0xff]  ;;  %v822_v16 = vld [vmem:[%s1105_s1 + $0x18] sm:$0xff]  ;;  %v821_v20 = vld [vmem:[%s1105_s1 + $0x10] sm:$0xff] }
   0x6   :  { %442 = vmatpush.bf16.msra.mxu0 %v825_v3  ;;  %v831_v13 = vld [vmem:[%s1105_s1 + $0x60] sm:$0xff]  ;;  %v830_v17 = vld [vmem:[%s1105_s1 + $0x58] sm:$0xff]  ;;  %v829_v21 = vld [vmem:[%s1105_s1 + $0x50] sm:$0xff] }
   0x7   :  { %455 = vmatpush.bf16.msra.mxu1 %v833_v4  ;;  %v839_v14 = vld [vmem:[%s1105_s1 + $0xa0] sm:$0xff]  ;;  %v838_v18 = vld [vmem:[%s1105_s1 + $0x98] sm:$0xff]  ;;  %v837_v22 = vld [vmem:[%s1105_s1 + $0x90] sm:$0xff] }
   0x8   :  { %468 = vmatpush.bf16.msra.mxu2 %v841_v5  ;;  %v847_v15 = vld [vmem:[%s1105_s1 + $0xe0] sm:$0xff]  ;;  %v846_v19 = vld [vmem:[%s1105_s1 + $0xd8] sm:$0xff]  ;;  %v845_v23 = vld [vmem:[%s1105_s1 + $0xd0] sm:$0xff] }
   0x9   :  { %481 = vmatpush.bf16.msra.mxu3 %v849_v7  ;;  %v820_v24 = vld [vmem:[%s1105_s1 + $0x8] sm:$0xff]  ;;  %v819_v27 = vld [vmem:[%s1105_s1] sm:$0xff]  ;;  %v858_v32 = vld [vmem:[%s1105_s1 + $0x138] sm:$0xff] }
   0xa   :  { %443 = vmatpush.bf16.msra.mxu0 %v824_v8  ;;  %v828_v25 = vld [vmem:[%s1105_s1 + $0x48] sm:$0xff]  ;;  %v827_v29 = vld [vmem:[%s1105_s1 + $0x40] sm:$0xff]  ;;  %v866_v33 = vld [vmem:[%s1105_s1 + $0x178] sm:$0xff] }
   0xb   :  { %456 = vmatpush.bf16.msra.mxu1 %v832_v9  ;;  %v836_v26 = vld [vmem:[%s1105_s1 + $0x88] sm:$0xff]  ;;  %v27_v30 = vld [vmem:[%s1107_s0] sm:$0xff]  ;;  %v29_v35 = vld [vmem:[%s1107_s0 + $0x10] sm:$0xff] }
   0xc   :  { %469 = vmatpush.bf16.msra.mxu2 %v840_v10  ;;  %v844_v28 = vld [vmem:[%s1105_s1 + $0xc8] sm:$0xff]  ;;  %v835_v34 = vld [vmem:[%s1105_s1 + $0x80] sm:$0xff]  ;;  %v34_v36 = vpack.c.bf16 %v27_v30, %v27_v30  ;;  %v30_v40 = vld [vmem:[%s1107_s0 + $0x18] sm:$0xff]  ;;  %v36_v43 = vpack.c.bf16 %v29_v35, %v29_v35 }
   0xd   :  { %482 = vmatpush.bf16.msra.mxu3 %v848_v11  ;;  %v28_v31 = vld [vmem:[%s1107_s0 + $0x8] sm:$0xff]  ;;  %v843_v38 = vld [vmem:[%s1105_s1 + $0xc0] sm:$0xff]  ;;  %v857_v41 = vld [vmem:[%s1105_s1 + $0x130] sm:$0xff]  ;;  %v37_v44 = vpack.c.bf16 %v30_v40, %v30_v40 }
   0xe   :  { %444 = vmatpush.bf16.msra.mxu0 %v823_v12  ;;  %v35_v37 = vpack.c.bf16 %v28_v31, %v28_v31  ;;  %v867_v39 = vld [vmem:[%s1105_s1 + $0x180] sm:$0xff]  ;;  %v865_v42 = vld [vmem:[%s1105_s1 + $0x170] sm:$0xff]  ;;  %v856_v45 = vld [vmem:[%s1105_s1 + $0x128] sm:$0xff] }
   0xf   :  { %457 = vmatpush.bf16.msra.mxu1 %v831_v13  ;;  %v864_v46 = vld [vmem:[%s1105_s1 + $0x168] sm:$0xff]  ;;  %v855_v47 = vld [vmem:[%s1105_s1 + $0x120] sm:$0xff]  ;;  %v854_v49 = vld [vmem:[%s1105_s1 + $0x118] sm:$0xff] }
  0x10   :  { %470 = vmatpush.bf16.msra.mxu2 %v839_v14  ;;  %v863_v48 = vld [vmem:[%s1105_s1 + $0x160] sm:$0xff]  ;;  %v862_v50 = vld [vmem:[%s1105_s1 + $0x158] sm:$0xff]  ;;  %v33_v51 = vld [vmem:[%s1107_s0 + $0x30] sm:$0xff] }
  0x11   :  { %483 = vmatpush.bf16.msra.mxu3 %v847_v15  ;;  %v853_v52 = vld [vmem:[%s1105_s1 + $0x110] sm:$0xff]  ;;  %v40_v54 = vpack.c.bf16 %v33_v51, %v33_v51  ;;  %v852_v55 = vld [vmem:[%s1105_s1 + $0x108] sm:$0xff]  ;;  %v851_v57 = vld [vmem:[%s1105_s1 + $0x100] sm:$0xff] }
  0x12   :  { %445 = vmatpush.bf16.msra.mxu0 %v822_v16  ;;  %v861_v53 = vld [vmem:[%s1105_s1 + $0x150] sm:$0xff]  ;;  %v860_v56 = vld [vmem:[%s1105_s1 + $0x148] sm:$0xff]  ;;  %v859_v58 = vld [vmem:[%s1105_s1 + $0x140] sm:$0xff] }
  0x13   :  { %458 = vmatpush.bf16.msra.mxu1 %v830_v17  ;;  %v31_v59 = vld [vmem:[%s1107_s0 + $0x20] sm:$0xff]  ;;  %v32_v60 = vld [vmem:[%s1107_s0 + $0x28] sm:$0xff] }
  0x14   :  { %471 = vmatpush.bf16.msra.mxu2 %v838_v18  ;;  %v38_v61 = vpack.c.bf16 %v31_v59, %v31_v59  ;;  %v39_v62 = vpack.c.bf16 %v32_v60, %v32_v60  ;;  %v869_v63 = vld [vmem:[%s1109_s3 + $0x8] sm:$0xff]  ;;  %v868_v2 = vld [vmem:[%s1109_s3] sm:$0xff] }
  0x15   :  { %484 = vmatpush.bf16.msra.mxu3 %v846_v19  ;;  %v870_v5 = vld [vmem:[%s1110_s5] sm:$0xff] }
  0x16   :  { %446 = vmatpush.bf16.msra.mxu0 %v821_v20  ;;  %v871_v8 = vld [vmem:[%s1106_s2] ss:$0 sm:$0xff] }
  0x17   :  { %459 = vmatpush.bf16.msra.mxu1 %v829_v21 }
  0x18   :  { %472 = vmatpush.bf16.msra.mxu2 %v837_v22 }
  0x19   :  { %485 = vmatpush.bf16.msra.mxu3 %v845_v23 }
  0x1a   :  { %447 = vmatpush.bf16.msra.mxu0 %v820_v24 }
  0x1b   :  { %460 = vmatpush.bf16.msra.mxu1 %v828_v25 }
  0x1c   :  { %473 = vmatpush.bf16.msra.mxu2 %v836_v26  ;;  %v872_v26 = vld [vmem:[%s1108_s4] ss:$0 sm:$0xff] }
  0x1d   :  { %486 = vmatpush.bf16.msra.mxu3 %v844_v28 }
  0x1e   :  { %448 = vmatpush.bf16.msra.mxu0 %v819_v27 }
  0x1f   :  { %461 = vmatpush.bf16.msra.mxu1 %v827_v29 }
  0x20   :  { %474 = vmatpush.bf16.msra.mxu2 %v835_v34 }
  0x21   :  { %449 = vmatmul.bf16.vlgmr.msra.gmra.mxu0 %v34_v36  ;;  %487 = vmatpush.bf16.msra.mxu3 %v843_v38 }
  0x22   :  { %493 = vmatpush.bf16.msrb.mxu0 %v858_v32  ;;  %462 = vmatmul.bf16.vlgmr.msra.gmra.mxu1 %v35_v37  ;;  %v873_v32 = vld [vmem:[%s1111_s6] ss:$0 sm:$0xff] }
  0x23   :  { %506 = vmatpush.bf16.msrb.mxu1 %v866_v33  ;;  %475 = vmatmul.bf16.vlgmr.msra.gmra.mxu2 %v36_v43 }
  0x24   :  { %526 = vmatpush.bf16.msrb.mxu2 %v867_v39  ;;  %488 = vmatmul.bf16.vlgmr.msra.gmra.mxu3 %v37_v44 }
  0x25   :  { %564 = vmatpush.bf16.msrb.mxu3 %v869_v63 }
  0x26   :  { %494 = vmatpush.bf16.msrb.mxu0 %v857_v41 }
  0x27   :  { %507 = vmatpush.bf16.msrb.mxu1 %v865_v42 }
  0x28   :  { %595 = vmatpush.bf16.msra.mxu2 %v870_v5 }
  0x29   :  { %565 = vmatpush.bf16.msrb.mxu3 %v868_v2 }
  0x2a   :  { %495 = vmatpush.bf16.msrb.mxu0 %v856_v45 }
  0x2b   :  { %508 = vmatpush.bf16.msrb.mxu1 %v864_v46 }
  0x2e   :  { %496 = vmatpush.bf16.msrb.mxu0 %v855_v47 }
  0x2f   :  { %509 = vmatpush.bf16.msrb.mxu1 %v863_v48 }
  0x32   :  { %497 = vmatpush.bf16.msrb.mxu0 %v854_v49 }
  0x33   :  { %510 = vmatpush.bf16.msrb.mxu1 %v862_v50  ;;  %804 = vmatmul.msk.bf16.vlgmr.msrb.gmra.mxu2 %vm437_vm0, %v40_v54 }
  0x36   :  { %498 = vmatpush.bf16.msrb.mxu0 %v853_v52 }
  0x37   :  { %511 = vmatpush.bf16.msrb.mxu1 %v861_v53 }
  0x3a   :  { %499 = vmatpush.bf16.msrb.mxu0 %v852_v55 }
  0x3b   :  { %512 = vmatpush.bf16.msrb.mxu1 %v860_v56 }
  0x3e   :  { %500 = vmatpush.bf16.msrb.mxu0 %v851_v57 }
  0x3f   :  { %513 = vmatpush.bf16.msrb.mxu1 %v859_v58 }
  0x41   :  { %501 = vmatmul.bf16.vlgmr.msrb.gmra.mxu0 %v38_v61 }
  0x42   :  { %514 = vmatmul.bf16.vlgmr.msrb.gmra.mxu1 %v39_v62 }
  0x9e   :  { %v450_v0 = vpop.f32.mrf.mxu0 }
  0x9f   :  { %v463_v1 = vpop.f32.mrf.mxu1  ;;  %v451_v9 = vadd.f32 %v871_v8, %v450_v0 }
  0xa1   :  { %v464_v12 = vadd.f32 %v463_v1, %v451_v9 }
  0xa6   :  { %v452_v3 = vpop.f32.mrf.mxu0  ;;  %v476_v6 = vpop.f32.mrf.mxu2 }
  0xa7   :  { %v465_v4 = vpop.f32.mrf.mxu1  ;;  %v489_v7 = vpop.f32.mrf.mxu3  ;;  %v477_v13 = vadd.f32 %v476_v6, %v464_v12 }
  0xa9   :  { %v490_v15 = vadd.f32 %v489_v7, %v477_v13 }
  0xae   :  { %v478_v10 = vpop.f32.mrf.mxu2 }
  0xaf   :  { %v491_v11 = vpop.f32.mrf.mxu3 }
  0xb6   :  { %v528_v14 = vpop.f32.mrf.mxu2 }
  0xbe   :  { %v502_v16 = vpop.f32.mrf.mxu0  ;;  %v530_v20 = vpop.f32.mrf.mxu2 }
  0xbf   :  { %v515_v17 = vpop.f32.mrf.mxu1  ;;  %v503_v18 = vadd.f32 %v502_v16, %v490_v15 }
  0xc1   :  { %v516_v19 = vadd.f32 %v515_v17, %v503_v18 }
  0xc3   :  { %v529_v21 = vadd.f32 %v528_v14, %v516_v19 }
  0xc5   :  { %v532_v22 = vmax.f32 %v529_v21, 0.0 }
  0xc6   :  { %v504_v23 = vpop.f32.mrf.mxu0 }
  0xc7   :  { %v517_v24 = vpop.f32.mrf.mxu1  ;;  %v533_v25 = vpack.c.bf16 %v532_v22, %v532_v22 }
  0xc9   :  { %813 = vmatmul.msk.bf16.vlgmr.msrb.gmra.mxu3 %vm554_vm1, %v533_v25 }
 0x14c   :  { %v567_v27 = vpop.f32.mrf.mxu3 }
 0x14d   :  { %v568_v28 = vadd.f32 %v872_v26, %v567_v27 }
 0x14f   :  { %v571_v29 = vmax.f32 %v568_v28, 0.0 }
 0x151   :  { %v572_v30 = vpack.c.bf16 %v571_v29, %v571_v29 }
 0x153   :  { %818 = vmatmul.msk.bf16.vlgmr.msra.gmra.mxu2 %vm437_vm0, %v572_v30 }
 0x154   :  { %v569_v31 = vpop.f32.mrf.mxu3 }
 0x1d6   :  { %v597_v33 = vpop.f32.mrf.mxu2 }
 0x1d7   :  { %v598_v34 = vadd.f32 %v873_v32, %v597_v33 }
 0x1d9   :  { %v601_v35 = vpack.c.bf16 %v598_v34, %v598_v34 }
 0x1db   :  { %603 = vst.msk [vmem:[%s1112_s7] sm:$0xf] %vm602_vm2, %v601_v35 }
 0x1de   :  { %v599_v36 = vpop.f32.mrf.mxu2 }

</bundles_post_ra>
